<compile_context>
chip_gen: v7x
topology: tpu7x:2x2x1
jax: 0.10.0
libtpu: 0.0.40
codegen_flags: <defaults>
</compile_context>

<pallas_src>
import functools

import jax
import jax.numpy as jnp
from jax.experimental import pallas as pl
from jax.experimental.pallas import tpu as pltpu

LN_EPS = 1e-5
_MAX_H_CHUNK = 512          # widest hidden-dim chunk processed per MXU pass
_MIB = 1024 * 1024


def _round_up(v, m):
    return (v + m - 1) // m * m


def _cdiv(a, b):
    return -(-a // b)


# ---------------------------------------------------------------------------
# Kernel
# ---------------------------------------------------------------------------
def _prenorm_ffn_kernel(x_ref, g_ref, b_ref, w1_ref, b1_ref, w2_ref, b2_ref,
                        o_ref, *scratch, d_true, h_chunk, n_h_chunks):
    # ---- LayerNorm over the true (unpadded) feature count, in f32 ----
    x = x_ref[...].astype(jnp.float32)                        # (tm, Dp)
    inv_d = jnp.float32(1.0 / d_true)
    n_pad = x.shape[-1] - d_true                               # static
    mean = jnp.sum(x, axis=-1, keepdims=True) * inv_d          # padded lanes are 0
    centered = x - mean
    # Two-pass variance with an exact correction for the (Dp - d_true) padded
    # lanes (each contributes mean^2 to the centered sum of squares).
    ssq = jnp.sum(centered * centered, axis=-1, keepdims=True)
    var = (ssq - jnp.float32(n_pad) * mean * mean) * inv_d
    xn = centered * jax.lax.rsqrt(var + LN_EPS)
    # gamma/beta are zero-padded -> padded lanes of xn become exactly 0, so the
    # zero-padded weight rows/cols keep the FFN result exact.
    xn = xn * g_ref[...] + b_ref[...]
    xn_mx = xn.astype(w1_ref.dtype)                            # bf16 MXU operand

    mx_dtype = w2_ref.dtype

    def ffn_chunk(lo, hi):
        h = jnp.dot(xn_mx, w1_ref[:, lo:hi],
                    preferred_element_type=jnp.float32)
        h = h + b1_ref[:, lo:hi]
        # tanh-approximate GELU in bf16: tanh lowers to the EUP slot and the
        # remaining elementwise work is packed bf16 VALU (v6e/v7x); the value
        # feeds the second (bf16) matmul anyway.
        h = jax.nn.gelu(h.astype(mx_dtype), approximate=True)
        return jnp.dot(h, w2_ref[lo:hi, :], preferred_element_type=jnp.float32)

    if n_h_chunks == 1:
        # Fast path (common CoAtNet case): no accumulator scratch.
        o_ref[...] = (ffn_chunk(0, h_chunk) + b2_ref[...]).astype(o_ref.dtype)
    else:
        acc_ref = scratch[0]                                   # (tm, Dp) f32 VMEM
        for c in range(n_h_chunks):                            # small static unroll
            part = ffn_chunk(c * h_chunk, (c + 1) * h_chunk)
            if c == 0:
                acc_ref[...] = part
            else:
                acc_ref[...] += part
        o_ref[...] = (acc_ref[...] + b2_ref[...]).astype(o_ref.dtype)


# ---------------------------------------------------------------------------
# Host-side helpers
# ---------------------------------------------------------------------------
@functools.lru_cache(maxsize=1)
def _vmem_budget():
    """(tile-picker budget, vmem_limit_bytes), sized to the TPU generation."""
    cap = None
    try:
        cap = getattr(pltpu.get_tpu_info(), "vmem_capacity_bytes", None)
    except Exception:
        cap = None
    if not cap:
        cap = 64 * _MIB                       # conservative (v7x-class) fallback
    if cap <= 64 * _MIB:                      # v7x: 64 MiB/TC, leave Mosaic headroom
        return (cap * 55) // 100, (cap * 75) // 100
    # v5e / v6e: 128 MiB physical — use most of it so row tiles can grow.
    return min((cap * 70) // 100, 96 * _MIB), min((cap * 85) // 100, 110 * _MIB)


@functools.lru_cache(maxsize=1)
def _single_buffered_weights_supported():
    """Probe once, on a trivial kernel, whether pipeline_mode=pl.Buffered(1)
    works (instead of a broad except around the real pallas_call)."""
    if not hasattr(pl, "Buffered"):
        return False
    try:
        def k(a_ref, o_ref):
            o_ref[...] = a_ref[...] + 1.0

        f = pl.pallas_call(
            k,
            out_shape=jax.ShapeDtypeStruct((8, 128), jnp.float32),
            grid_spec=pltpu.PrefetchScalarGridSpec(
                num_scalar_prefetch=0,
                grid=(2,),
                in_specs=[pl.BlockSpec((8, 128), lambda i: (0, 0),
                                       pipeline_mode=pl.Buffered(1))],
                out_specs=pl.BlockSpec((8, 128), lambda i: (0, 0)),
            ),
        )
        jax.block_until_ready(f(jnp.zeros((8, 128), jnp.float32)))
        return True
    except Exception:       # probe only — real kernel errors are never masked
        return False


def _pick_tile_m(M, Dp, Hp, h_chunk, x_itemsize, out_itemsize, w_itemsize,
                 budget_bytes, single_buffered_weights):
    """Largest power-of-two row tile (<=2048) whose working set fits the budget."""
    wbuf = 1 if single_buffered_weights else 2
    weight_bytes = wbuf * (2 * Dp * Hp * w_itemsize + 4 * (3 * Dp + Hp))
    tile = 2048
    while tile > 8:
        act = 2 * tile * Dp * x_itemsize      # x tile, double-buffered
        act += 2 * tile * Dp * out_itemsize   # out tile, double-buffered
        act += 2 * tile * h_chunk * 4         # live GELU chunk / matmul temp, f32
        act += tile * Dp * 4                  # f32 accumulator scratch
        if weight_bytes + act <= budget_bytes:
            break
        tile //= 2
    return tile


def prepare_prenorm_ffn_params(gamma, beta, w1, b1, w2, b2, *,
                               weight_dtype=jnp.bfloat16):
    """Pad / cast the call-invariant PreNorm+FFN parameters once (model init).

    Zero padding keeps the math exact (see kernel comments).  Weights are cast
    to `weight_dtype` (bf16 by default, so results are not bit-identical to an
    f32 PyTorch forward); LayerNorm params and biases stay f32.
    """
    D, H = w1.shape
    assert gamma.shape == (D,) and beta.shape == (D,)
    assert b1.shape == (H,) and w2.shape == (H, D) and b2.shape == (D,)

    Dp = _round_up(D, 128)
    Hp0 = _round_up(H, 128)
    # cdiv-based hidden chunking: chunks stay wide (>= 256 once H > 512) so the
    # h @ W2 contraction never degrades to 128-deep MXU passes.
    if Hp0 <= _MAX_H_CHUNK:
        n_h_chunks, h_chunk = 1, Hp0
    else:
        n_h_chunks = _cdiv(Hp0, _MAX_H_CHUNK)
        h_chunk = _round_up(_cdiv(Hp0, n_h_chunks), 128)
    Hp = n_h_chunks * h_chunk

    g2 = jnp.pad(gamma.astype(jnp.float32).reshape(1, D), ((0, 0), (0, Dp - D)))
    be2 = jnp.pad(beta.astype(jnp.float32).reshape(1, D), ((0, 0), (0, Dp - D)))
    w1p = jnp.pad(w1.astype(weight_dtype), ((0, Dp - D), (0, Hp - H)))
    b1p = jnp.pad(b1.astype(jnp.float32).reshape(1, H), ((0, 0), (0, Hp - H)))
    w2p = jnp.pad(w2.astype(weight_dtype), ((0, Hp - H), (0, Dp - D)))
    b2p = jnp.pad(b2.astype(jnp.float32).reshape(1, D), ((0, 0), (0, Dp - D)))

    return {
        "D": D, "H": H, "Dp": Dp, "Hp": Hp,
        "h_chunk": h_chunk, "n_h_chunks": n_h_chunks,
        "weight_dtype": jnp.dtype(weight_dtype),
        "tensors": (g2, be2, w1p, b1p, w2p, b2p),
    }


def prenorm_ffn(x, params, *, tile_m=None, out_dtype=None):
    """PreNorm(dim, FeedForward, LayerNorm) forward: fn(norm(x)).

    x: (B, N, D) -> (B, N, D).  `params` comes from prepare_prenorm_ffn_params.
    """
    B, N, D = x.shape
    assert D == params["D"], "feature dim mismatch with prepared params"
    Dp, Hp = params["Dp"], params["Hp"]
    h_chunk, n_h_chunks = params["h_chunk"], params["n_h_chunks"]
    g2, be2, w1p, b1p, w2p, b2p = params["tensors"]
    out_dtype = jnp.dtype(out_dtype) if out_dtype is not None else jnp.dtype(x.dtype)
    M = B * N

    budget, vmem_limit = _vmem_budget()
    single_buf = _single_buffered_weights_supported()

    if tile_m is None:
        tile_m = _pick_tile_m(M, Dp, Hp, h_chunk,
                              jnp.dtype(x.dtype).itemsize, out_dtype.itemsize,
                              params["weight_dtype"].itemsize,
                              budget, single_buf)
    tile_m = max(8, _round_up(tile_m, 8))
    M8 = _round_up(M, 8)
    tile_m = min(tile_m, M8)
    if M8 >= 16:
        # Keep >= 2 grid steps so the "parallel" row axis can shard across
        # v7x's two TensorCores (harmless on v5e/v6e).
        tile_m = min(tile_m, _round_up(_cdiv(M8, 2), 8))
    Mp = _round_up(M, tile_m)
    grid_m = Mp // tile_m

    x2 = x.reshape(M, D)
    if Mp != M or Dp != D:                    # skip the extra HBM pass if aligned
        x2 = jnp.pad(x2, ((0, Mp - M), (0, Dp - D)))

    def const_spec(shape):
        # Weights/biases are revisited at block (0, 0) every grid step; a
        # single VMEM buffer suffices and halves their footprint.
        if single_buf:
            return pl.BlockSpec(shape, lambda i: (0, 0),
                                pipeline_mode=pl.Buffered(1))
        return pl.BlockSpec(shape, lambda i: (0, 0))

    kernel = functools.partial(_prenorm_ffn_kernel, d_true=D,
                               h_chunk=h_chunk, n_h_chunks=n_h_chunks)

    scratch_shapes = []
    if n_h_chunks > 1:
        scratch_shapes.append(pltpu.VMEM((tile_m, Dp), jnp.float32))

    grid_spec = pltpu.PrefetchScalarGridSpec(
        num_scalar_prefetch=0,
        grid=(grid_m,),
        in_specs=[
            pl.BlockSpec((tile_m, Dp), lambda i: (i, 0)),      # x rows
            const_spec((1, Dp)),                               # gamma
            const_spec((1, Dp)),                               # beta
            const_spec((Dp, Hp)),                              # W1 (bf16)
            const_spec((1, Hp)),                               # b1
            const_spec((Hp, Dp)),                              # W2 (bf16)
            const_spec((1, Dp)),                               # b2
        ],
        out_specs=pl.BlockSpec((tile_m, Dp), lambda i: (i, 0)),
        scratch_shapes=scratch_shapes,
    )

    out = pl.pallas_call(
        kernel,
        out_shape=jax.ShapeDtypeStruct((Mp, Dp), out_dtype),
        grid_spec=grid_spec,
        compiler_params=pltpu.CompilerParams(
            dimension_semantics=("parallel",),
            vmem_limit_bytes=int(vmem_limit),
        ),
    )(x2, g2, be2, w1p, b1p, w2p, b2p)

    if Mp != M or Dp != D:
        out = out[:M, :D]
    return out.reshape(B, N, D)


# ---------------------------------------------------------------------------
# Reference + self-test
# ---------------------------------------------------------------------------
def _reference(x, gamma, beta, w1, b1, w2, b2):
    # Pure-JAX f32 reference (PyTorch LayerNorm + exact-GELU FFN semantics).
    mean = jnp.mean(x, axis=-1, keepdims=True)
    var = jnp.mean((x - mean) ** 2, axis=-1, keepdims=True)
    xn = (x - mean) / jnp.sqrt(var + LN_EPS) * gamma + beta
    h = jax.nn.gelu(xn @ w1 + b1, approximate=False)
    return h @ w2 + b2


if __name__ == "__main__":
    key = jax.random.PRNGKey(0)

    def make_case(k, B, N, D, H, default_ln=True):
        ks = jax.random.split(k, 7)
        x = jax.random.normal(ks[0], (B, N, D), dtype=jnp.float32)
        if default_ln:  # PyTorch LayerNorm default init
            gamma = jnp.ones((D,), jnp.float32)
            beta = jnp.zeros((D,), jnp.float32)
        else:
            gamma = 1.0 + 0.1 * jax.random.normal(ks[1], (D,), jnp.float32)
            beta = 0.1 * jax.random.normal(ks[2], (D,), jnp.float32)
        w1 = jax.random.normal(ks[3], (D, H), jnp.float32) * 0.02
        b1 = jax.random.normal(ks[4], (H,), jnp.float32) * 0.02
        w2 = jax.random.normal(ks[5], (H, D), jnp.float32) * 0.02
        b2 = jax.random.normal(ks[6], (D,), jnp.float32) * 0.02
        return x, gamma, beta, w1, b1, w2, b2

    k1, k2, k3 = jax.random.split(key, 3)

    # Case 1: canonical small CoAtNet-ish block; auto tile, grid_m >= 2.
    a1 = make_case(k1, 2, 8, 32, 64, default_ln=True)
    p1 = prepare_prenorm_ffn_params(*a1[1:])
    out1 = jax.block_until_ready(prenorm_ffn(a1[0], p1))
    ref1 = _reference(*a1)
    assert out1.shape == a1[0].shape and out1.dtype == a1[0].dtype
    # bf16 MXU operands + tanh-approx GELU -> relaxed tolerance vs exact f32 ref.
    assert jnp.allclose(out1, ref1, atol=2e-2, rtol=2e-2), "case1 mismatch"

    # Case 2: ragged M (row padding) + non-128 D/H (lane padding), explicit
    # small tile so the grid has several pipelined steps.
    a2 = make_case(k2, 2, 7, 48, 80, default_ln=False)
    p2 = prepare_prenorm_ffn_params(*a2[1:])
    out2 = jax.block_until_ready(prenorm_ffn(a2[0], p2, tile_m=8))
    ref2 = _reference(*a2)
    assert out2.shape == a2[0].shape
    assert jnp.allclose(out2, ref2, atol=2e-2, rtol=2e-2), "case2 mismatch"

    # Case 3: H > 512 exercises cdiv hidden chunking (Hp=1152 -> 3 x 384) and
    # the VMEM accumulator-scratch path.
    a3 = make_case(k3, 1, 24, 64, 1100, default_ln=False)
    p3 = prepare_prenorm_ffn_params(*a3[1:])
    out3 = jax.block_until_ready(prenorm_ffn(a3[0], p3))
    ref3 = _reference(*a3)
    assert out3.shape == a3[0].shape
    assert jnp.allclose(out3, ref3, atol=3e-2, rtol=3e-2), "case3 mismatch"

    print("KERNEL_OK")
</pallas_src>

<mosaic_0001>
module attributes {stable_mosaic.version = 11 : i64} {
  func.func @k(%arg0: i32, %arg1: memref<8x128xf32, #tpu.memory_space<vmem>>, %arg2: memref<8x128xf32, #tpu.memory_space<vmem>>) attributes {dimension_semantics = [#tpu.dimension_semantics<arbitrary>], iteration_bounds = array<i64: 2>, scalar_prefetch = 0 : i64, scratch_operands = 0 : i64, tpu.core_type = #tpu.core_type<tc>, window_params = [{pipeline_mode = #tpu.pipeline_mode<synchronous>, transform_indices = @transform_0, window_bounds = array<i64: 8, 128>}, {pipeline_mode = #tpu.pipeline_mode<synchronous>, transform_indices = @transform_1, window_bounds = array<i64: 8, 128>}]} {
    %c0 = arith.constant 0 : index
    %c0_0 = arith.constant 0 : index
    %0 = vector.load %arg1[%c0, %c0_0] : memref<8x128xf32, #tpu.memory_space<vmem>>, vector<8x128xf32>
    %cst = arith.constant 1.000000e+00 : f32
    %1 = vector.broadcast %cst : f32 to vector<8x128xf32>
    %2 = arith.addf %0, %1 : vector<8x128xf32>
    %c0_1 = arith.constant 0 : index
    %c0_2 = arith.constant 0 : index
    %3 = vector.load %arg2[%c0_1, %c0_2] : memref<8x128xf32, #tpu.memory_space<vmem>>, vector<8x128xf32>
    tpu.vector_store %arg2[%c0_1, %c0_2], %2 {strides = array<i32>} : memref<8x128xf32, #tpu.memory_space<vmem>>, vector<8x128xf32>,
    return
  }
  func.func @transform_0(%arg0: i32) -> (i32, i32) {
    %c0_i32 = arith.constant 0 : i32
    %c0_i32_0 = arith.constant 0 : i32
    %c0_i32_1 = arith.constant 0 : i32
    return %c0_i32, %c0_i32_0 : i32, i32
  }
  func.func @transform_1(%arg0: i32) -> (i32, i32) {
    %c0_i32 = arith.constant 0 : i32
    %c0_i32_0 = arith.constant 0 : i32
    %c0_i32_1 = arith.constant 0 : i32
    return %c0_i32, %c0_i32_0 : i32, i32
  }
}

module attributes {stable_mosaic.version = 11 : i64} {
  func.func @_prenorm_ffn_kernel(%arg0: i32, %arg1: memref<8x128xf32, #tpu.memory_space<vmem>>, %arg2: memref<1x128xf32, #tpu.memory_space<vmem>>, %arg3: memref<1x128xf32, #tpu.memory_space<vmem>>, %arg4: memref<128x128xbf16, #tpu.memory_space<vmem>>, %arg5: memref<1x128xf32, #tpu.memory_space<vmem>>, %arg6: memref<128x128xbf16, #tpu.memory_space<vmem>>, %arg7: memref<1x128xf32, #tpu.memory_space<vmem>>, %arg8: memref<8x128xf32, #tpu.memory_space<vmem>>) attributes {dimension_semantics = [#tpu.dimension_semantics<parallel>], iteration_bounds = array<i64: 2>, scalar_prefetch = 0 : i64, scratch_operands = 0 : i64, tpu.core_type = #tpu.core_type<tc>, window_params = [{transform_indices = @transform_0, window_bounds = array<i64: 8, 128>}, {pipeline_mode = #tpu.pipeline_mode<synchronous>, transform_indices = @transform_1, window_bounds = array<i64: 1, 128>}, {pipeline_mode = #tpu.pipeline_mode<synchronous>, transform_indices = @transform_2, window_bounds = array<i64: 1, 128>}, {pipeline_mode = #tpu.pipeline_mode<synchronous>, transform_indices = @transform_3, window_bounds = array<i64: 128, 128>}, {pipeline_mode = #tpu.pipeline_mode<synchronous>, transform_indices = @transform_4, window_bounds = array<i64: 1, 128>}, {pipeline_mode = #tpu.pipeline_mode<synchronous>, transform_indices = @transform_5, window_bounds = array<i64: 128, 128>}, {pipeline_mode = #tpu.pipeline_mode<synchronous>, transform_indices = @transform_6, window_bounds = array<i64: 1, 128>}, {transform_indices = @transform_7, window_bounds = array<i64: 8, 128>}]} {
    %c0 = arith.constant 0 : index
    %c0_0 = arith.constant 0 : index
    %0 = vector.load %arg1[%c0, %c0_0] : memref<8x128xf32, #tpu.memory_space<vmem>>, vector<8x128xf32>
    %cst = arith.constant dense<0.000000e+00> : vector<8xf32>
    %1 = vector.multi_reduction <add>, %0, %cst [1] : vector<8x128xf32> to vector<8xf32>
    %2 = vector.shape_cast %1 : vector<8xf32> to vector<8x1xf32>
    %cst_1 = arith.constant 3.125000e-02 : f32
    %3 = vector.broadcast %cst_1 : f32 to vector<8x1xf32>
    %4 = arith.mulf %2, %3 : vector<8x1xf32>
    %5 = vector.broadcast %4 : vector<8x1xf32> to vector<8x128xf32>
    %6 = arith.subf %0, %5 : vector<8x128xf32>
    %7 = arith.mulf %6, %6 : vector<8x128xf32>
    %cst_2 = arith.constant dense<0.000000e+00> : vector<8xf32>
    %8 = vector.multi_reduction <add>, %7, %cst_2 [1] : vector<8x128xf32> to vector<8xf32>
    %9 = vector.shape_cast %8 : vector<8xf32> to vector<8x1xf32>
    %cst_3 = arith.constant 9.600000e+01 : f32
    %10 = vector.broadcast %cst_3 : f32 to vector<8x1xf32>
    %11 = arith.mulf %10, %4 : vector<8x1xf32>
    %12 = arith.mulf %11, %4 : vector<8x1xf32>
    %13 = arith.subf %9, %12 : vector<8x1xf32>
    %cst_4 = arith.constant 3.125000e-02 : f32
    %14 = vector.broadcast %cst_4 : f32 to vector<8x1xf32>
    %15 = arith.mulf %13, %14 : vector<8x1xf32>
    %cst_5 = arith.constant 9.99999974E-6 : f32
    %16 = vector.broadcast %cst_5 : f32 to vector<8x1xf32>
    %17 = arith.addf %15, %16 : vector<8x1xf32>
    %18 = math.rsqrt %17 : vector<8x1xf32>
    %19 = vector.broadcast %18 : vector<8x1xf32> to vector<8x128xf32>
    %20 = arith.mulf %6, %19 : vector<8x128xf32>
    %c0_6 = arith.constant 0 : index
    %c0_7 = arith.constant 0 : index
    %21 = vector.load %arg2[%c0_6, %c0_7] : memref<1x128xf32, #tpu.memory_space<vmem>>, vector<1x128xf32>
    %22 = vector.broadcast %21 : vector<1x128xf32> to vector<8x128xf32>
    %23 = arith.mulf %20, %22 : vector<8x128xf32>
    %c0_8 = arith.constant 0 : index
    %c0_9 = arith.constant 0 : index
    %24 = vector.load %arg3[%c0_8, %c0_9] : memref<1x128xf32, #tpu.memory_space<vmem>>, vector<1x128xf32>
    %25 = vector.broadcast %24 : vector<1x128xf32> to vector<8x128xf32>
    %26 = arith.addf %23, %25 : vector<8x128xf32>
    %27 = arith.truncf %26 : vector<8x128xf32> to vector<8x128xbf16>
    %c0_10 = arith.constant 0 : index
    %c0_11 = arith.constant 0 : index
    %28 = vector.load %arg4[%c0_10, %c0_11] : memref<128x128xbf16, #tpu.memory_space<vmem>>, vector<128x128xbf16>
    %cst_12 = arith.constant dense<0.000000e+00> : vector<8x128xf32>
    %29 = tpu.matmul %27, %28, %cst_12 {dimension_numbers = #tpu.dot_dimension_numbers<[1], [0], [0], [1], [0, 0, 1, 1], [], []>} : vector<8x128xbf16>, vector<128x128xbf16>, vector<8x128xf32> -> vector<8x128xf32>
    %c0_13 = arith.constant 0 : index
    %c0_14 = arith.constant 0 : index
    %30 = vector.load %arg5[%c0_13, %c0_14] : memref<1x128xf32, #tpu.memory_space<vmem>>, vector<1x128xf32>
    %31 = vector.broadcast %30 : vector<1x128xf32> to vector<8x128xf32>
    %32 = arith.addf %29, %31 : vector<8x128xf32>
    %33 = arith.truncf %32 : vector<8x128xf32> to vector<8x128xbf16>
    %34 = arith.mulf %33, %33 : vector<8x128xbf16>
    %35 = arith.mulf %33, %34 : vector<8x128xbf16>
    %cst_15 = arith.constant 4.467770e-02 : bf16
    %36 = vector.broadcast %cst_15 : bf16 to vector<8x128xbf16>
    %37 = arith.mulf %36, %35 : vector<8x128xbf16>
    %38 = arith.addf %33, %37 : vector<8x128xbf16>
    %cst_16 = arith.constant 7.968750e-01 : bf16
    %39 = vector.broadcast %cst_16 : bf16 to vector<8x128xbf16>
    %40 = arith.mulf %39, %38 : vector<8x128xbf16>
    %41 = math.tanh %40 : vector<8x128xbf16>
    %cst_17 = arith.constant 1.000000e+00 : bf16
    %42 = vector.broadcast %cst_17 : bf16 to vector<8x128xbf16>
    %43 = arith.addf %42, %41 : vector<8x128xbf16>
    %cst_18 = arith.constant 5.000000e-01 : bf16
    %44 = vector.broadcast %cst_18 : bf16 to vector<8x128xbf16>
    %45 = arith.mulf %44, %43 : vector<8x128xbf16>
    %46 = arith.mulf %33, %45 : vector<8x128xbf16>
    %c0_19 = arith.constant 0 : index
    %c0_20 = arith.constant 0 : index
    %47 = vector.load %arg6[%c0_19, %c0_20] : memref<128x128xbf16, #tpu.memory_space<vmem>>, vector<128x128xbf16>
    %cst_21 = arith.constant dense<0.000000e+00> : vector<8x128xf32>
    %48 = tpu.matmul %46, %47, %cst_21 {dimension_numbers = #tpu.dot_dimension_numbers<[1], [0], [0], [1], [0, 0, 1, 1], [], []>} : vector<8x128xbf16>, vector<128x128xbf16>, vector<8x128xf32> -> vector<8x128xf32>
    %c0_22 = arith.constant 0 : index
    %c0_23 = arith.constant 0 : index
    %49 = vector.load %arg7[%c0_22, %c0_23] : memref<1x128xf32, #tpu.memory_space<vmem>>, vector<1x128xf32>
    %50 = vector.broadcast %49 : vector<1x128xf32> to vector<8x128xf32>
    %51 = arith.addf %48, %50 : vector<8x128xf32>
    %c0_24 = arith.constant 0 : index
    %c0_25 = arith.constant 0 : index
    %52 = vector.load %arg8[%c0_24, %c0_25] : memref<8x128xf32, #tpu.memory_space<vmem>>, vector<8x128xf32>
    tpu.vector_store %arg8[%c0_24, %c0_25], %51 {strides = array<i32>} : memref<8x128xf32, #tpu.memory_space<vmem>>, vector<8x128xf32>,
    return
  }
  func.func @transform_0(%arg0: i32) -> (i32, i32) {
    %c0_i32 = arith.constant 0 : i32
    %c0_i32_0 = arith.constant 0 : i32
    return %arg0, %c0_i32 : i32, i32
  }
  func.func @transform_1(%arg0: i32) -> (i32, i32) {
    %c0_i32 = arith.constant 0 : i32
    %c0_i32_0 = arith.constant 0 : i32
    %c0_i32_1 = arith.constant 0 : i32
    return %c0_i32, %c0_i32_0 : i32, i32
  }
  func.func @transform_2(%arg0: i32) -> (i32, i32) {
    %c0_i32 = arith.constant 0 : i32
    %c0_i32_0 = arith.constant 0 : i32
    %c0_i32_1 = arith.constant 0 : i32
    return %c0_i32, %c0_i32_0 : i32, i32
  }
  func.func @transform_3(%arg0: i32) -> (i32, i32) {
    %c0_i32 = arith.constant 0 : i32
    %c0_i32_0 = arith.constant 0 : i32
    %c0_i32_1 = arith.constant 0 : i32
    return %c0_i32, %c0_i32_0 : i32, i32
  }
  func.func @transform_4(%arg0: i32) -> (i32, i32) {
    %c0_i32 = arith.constant 0 : i32
    %c0_i32_0 = arith.constant 0 : i32
    %c0_i32_1 = arith.constant 0 : i32
    return %c0_i32, %c0_i32_0 : i32, i32
  }
  func.func @transform_5(%arg0: i32) -> (i32, i32) {
    %c0_i32 = arith.constant 0 : i32
    %c0_i32_0 = arith.constant 0 : i32
    %c0_i32_1 = arith.constant 0 : i32
    return %c0_i32, %c0_i32_0 : i32, i32
  }
  func.func @transform_6(%arg0: i32) -> (i32, i32) {
    %c0_i32 = arith.constant 0 : i32
    %c0_i32_0 = arith.constant 0 : i32
    %c0_i32_1 = arith.constant 0 : i32
    return %c0_i32, %c0_i32_0 : i32, i32
  }
  func.func @transform_7(%arg0: i32) -> (i32, i32) {
    %c0_i32 = arith.constant 0 : i32
    %c0_i32_0 = arith.constant 0 : i32
    return %arg0, %c0_i32 : i32, i32
  }
}

</mosaic_0001>

<bundles_post_ra>
// kernel: tpu_custom_call.1
= control target key start
LH: loop header
LB: loop body
LE: loop exit
PB: predicated region body
PF: predicated region fallthrough
CT: control target
= control target key end

     0   :  { %6 = vsyncpa [#allocation3], 0  ;;  %s341_s0 = inlined_call_operand.hbm [shape: f32[8,128], index: 0, kind: input, shape index: {}]   ;;  %s342_s1 = inlined_call_operand.hbm [shape: f32[8,128], index: 1, kind: output, shape index: {}]  }
   0x1   :  { %7 = vsyncpa [#allocation4], 0  ;;  %s262_s6 = smov 0  }
   0x2 LB: > { %s145_s7 = sadd.s32 4294967295, %s248_s6   ;;  %p146_p0 = scmp.ge.s32.totalorder %s248_s6, 1  ;;  %s248_s6 = sphi %s262_s6, %s13_s6  }
   0x3   : > { %p60_p1 = scmp.lt.s32.totalorder %s248_s6, 3  ;;  %p276_p3 = scmp.eq.s32.totalorder %s145_s7, 0 }
   0x4   : > { %s250_s10 = smov [#allocation2]   ;;  %s180_s15 = scalar_lea.hbm %s341_s0, 128 }
   0x5   : > { %p270_p2 = pnand %p146_p0, %p60_p1  ;;  %s73_s11 = sshll.u32 %s250_s10, 4  ;;  %s74_s11 = int_to_ptr.vmem [resolvable:$true] %s73_s11 }
   0x6   : > { %s347_s9 = scalar_select %p276_p3, 1, 0 }
   0x7   : > { %s346_s8 = scalar_select %p270_p2, 1, 0 }
   0x8   : > { %p162_p4 = pneg %p270_p2  ;;  %p181_p6 = scmp.ne.s32.totalorder %s341_s0, %s180_s15 }
   0x9   : > { %p187_p10 = scmp.lt.u32.totalorder %s180_s15, %s341_s0 }
   0xa   : > { %p284_p5 = pnand %p276_p3, %p162_p4 }
   0xc   : > { %p182_p7 = pneg %p284_p5 }
   0xe   : > { %p183_p8 = pnand %p182_p7, %p181_p6 }
  0x10   : > { %p184_p9 = pneg %p183_p8 }
  0x12   : > { %p189_p11 = pnand %p187_p10, %p184_p9 }
  0x14   : > { %192 = shalt.err (!%p189_p11)
}
  0x15   : > { %s193_s20 = scalar_lea.vmem %s74_s11, 128  ;;  %p201_p1 = scmp.lt.s32.totalorder %s74_s11, %s74_s11 }
  0x16   : > { %p194_p12 = scmp.ne.s32.totalorder %s74_s11, %s193_s20  ;;  %p202_p4 = scmp.lt.s32.totalorder %s193_s20, %s193_s20 }
  0x18   : > { %p196_p13 = pnand %p194_p12, %p182_p7  ;;  %p203_p3 = por %p202_p4, %p201_p1 }
  0x1a   : > { %p197_p0 = pneg %p196_p13 }
  0x1c   : > { %p204_p2 = pnand %p203_p3, %p197_p0 }
  0x1e   : > { %207 = shalt.err (!%p204_p2)
}
  0x1f   : > { %165 = dma.hbm_to_vmem [thread:$0]  (!%p284_p5), %s341_s0, 128, %s74_s11, [#allocation3]  }
  0x20   : > { %p349_p6 = scmp.ne.s32.totalorder %s346_s8, 0 }
  0x21   : > { %p350_p8 = scmp.ne.s32.totalorder (!%p349_p6), %s347_s9, 0 }
  0x22   : > { %86 = sbr.rel (%p349_p6) target bundleno = 67 (0x43), region = 24 }
  0x29   : > { %239 = dma.done.wait (%p350_p8), [#allocation3], 128  }
  0x2a   : > { %241 = vsyncadd (%p350_p8), [#allocation3], 4294967168  ;;  %s251_s23 = smov [#allocation5]   ;;  %v96_v0 = vld [vmem:[#allocation2] sm:$0xff]  ;;  %p312_p2 = scmp.eq.s32.totalorder %s145_s7, 1 }
  0x2b   : > { %s106_s24 = sshll.u32 %s251_s23, 4  ;;  %v97_v1 = vadd.f32 1.0, %v96_v0  ;;  %s107_s24 = int_to_ptr.vmem [resolvable:$true] %s106_s24 }
  0x2c   : > { %s208_s26 = scalar_lea.vmem %s107_s24, 128  ;;  %p215_p9 = scmp.lt.s32.totalorder %s107_s24, %s107_s24 }
  0x2d   : > { %98 = vst [vmem:[#allocation5] sm:$0xff] %v97_v1  ;;  %p209_p3 = scmp.ne.s32.totalorder %s107_s24, %s208_s26  ;;  %p216_p10 = scmp.lt.s32.totalorder %s208_s26, %s208_s26 }
  0x2f   : > { %p210_p5 = pnand %p209_p3, %p312_p2  ;;  %p217_p11 = por %p216_p10, %p215_p9 }
  0x31   : > { %p211_p7 = pneg %p210_p5 }
  0x33   : > { %p218_p12 = pnand %p217_p11, %p211_p7 }
  0x35   : > { %221 = shalt.err (!%p218_p12)
}
  0x36   : > { %s222_s29 = scalar_lea.hbm %s342_s1, 128 }
  0x37   : > { %p223_p13 = scmp.ne.s32.totalorder %s342_s1, %s222_s29  ;;  %p228_p4 = scmp.lt.u32.totalorder %s222_s29, %s342_s1 }
  0x39   : > { %p224_p0 = pnand %p223_p13, %p312_p2 }
  0x3b   : > { %p225_p1 = pneg %p224_p0 }
  0x3d   : > { %p230_p6 = pnand %p228_p4, %p225_p1 }
  0x3f   : > { %233 = shalt.err (!%p230_p6)
}
  0x40   : > { %159 = dma.vmem_to_hbm [thread:$0]  (%p312_p2), %s107_s24, 128, %s342_s1, [#allocation4]  }
  0x41   : > { %243 = dma.done.wait (%p312_p2), [#allocation4], 128  }
  0x42   : > { %245 = vsyncadd (%p312_p2), [#allocation4], 4294967168 }
  0x43 PF: > { %s13_s6 = sadd.s32 1, %s248_s6  }
  0x44   : > { %p10_p8 = scmp.ge.s32.totalorder %s13_s6, 4  }
  0x46   :  { %12 = sbr.rel (!%p10_p8) target bundleno = 2 (0x2), region = 53 }
  0x4d   :  { %119 = vsyncpa [#allocation3], 1 }
  0x4e   :  { %121 = vsyncpa [#allocation3 + $0x1], 1 }
  0x4f   :  { %122 = vsyncpa [#allocation4], 1 }
  0x50   :  { %124 = vsyncpa [#allocation4 + $0x1], 1 }

// kernel: tpu_custom_call.1
= control target key start
LH: loop header
LB: loop body
LE: loop exit
PB: predicated region body
PF: predicated region fallthrough
CT: control target
= control target key end

     0   :  { %12 = vsyncpa [#allocation3], 0  ;;  %s1350_s0 = inlined_call_operand.hbm [shape: f32[16,128], index: 0, kind: input, shape index: {}]   ;;  %s1351_s1 = inlined_call_operand.vmem [shape: f32[1,128], index: 1, kind: input, shape index: {}]   ;;  %s1352_s2 = inlined_call_operand.vmem [shape: f32[1,128], index: 2, kind: input, shape index: {}]   ;;  %s1353_s3 = inlined_call_operand.hbm [shape: bf16[128,128], index: 3, kind: input, shape index: {}]   ;;  %s1354_s4 = inlined_call_operand.vmem [shape: f32[1,128], index: 4, kind: input, shape index: {}]   ;;  %s1355_s5 = inlined_call_operand.hbm [shape: bf16[128,128], index: 5, kind: input, shape index: {}]   ;;  %s1356_s6 = inlined_call_operand.vmem [shape: f32[1,128], index: 6, kind: input, shape index: {}]   ;;  %s1357_s7 = inlined_call_operand.hbm [shape: f32[16,128], index: 7, kind: output, shape index: {}]  }
   0x1   :  { %14 = vsyncpa [#allocation3 + $0x1], 0 }
   0x2   :  { %15 = vsyncpa [#allocation6], 0 }
   0x3   :  { %16 = vsyncpa [#allocation4], 0 }
   0x4   :  { %18 = vsyncpa [#allocation4 + $0x1], 0  ;;  %s1087_s24 = smov 0   ;;  %s1089_s25 = smov 0  }
   0x5   :  { %s1091_s26 = smov 0   ;;  %s1093_s27 = smov 0  }
   0x6 LB: > { %s1108_s28 = sadd.s32 4294967295, %s1037_s27   ;;  %s696_s29 = sadd.s32 4294967294, %s1037_s27   ;;  %s1037_s27 = sphi %s1093_s27, %s1377_s27   ;;  %s1033_s26 = sphi %s1091_s26, %s1376_s26   ;;  %s1029_s25 = sphi %s1089_s25, %s1375_s25   ;;  %s1025_s24 = sphi %s1087_s24, %s1374_s24  }
   0x7   : > { %p44_p0 = scmp.ne.s32.totalorder %s1029_s25, %s1025_s24  ;;  %p1358_p1 = scmp.eq.s32.totalorder %s1108_s28, 0 }
   0x8   : > { %p200_p3 = scmp.eq.s32.totalorder %s696_s29, 1  ;;  %p697_p5 = scmp.ge.s32.totalorder %s1037_s27, 1 }
   0x9   : > { %p1117_p4 = por %p1358_p1, %p44_p0  ;;  %p207_p7 = scmp.lt.s32.totalorder %s1037_s27, 3 }
   0xa   : > { %p1122_p6 = por %p200_p3, %p44_p0  ;;  %s1039_s10 = smov [#allocation5]  }
   0xb   : > { %s1361_s30 = scalar_select %p1117_p4, 1, 0 }
   0xc   : > { %s1362_s8 = scalar_select %p1122_p6, 1, 0 }
   0xd   : > { %p1127_p8 = pnand %p697_p5, %p207_p7  ;;  %s225_s11 = sshll.u32 %s1039_s10, 4  ;;  %s1131_s11 = int_to_ptr.vmem [resolvable:$true] %s225_s11 }
   0xe   : > { %s1040_s13 = smov [#allocation7]   ;;  %s881_s17 = scalar_lea.hbm %s1353_s3, 1024 }
   0xf   : > { %p802_p9 = pneg %p1127_p8  ;;  %s241_s14 = sshll.u32 %s1040_s13, 4  ;;  %s1142_s14 = int_to_ptr.vmem [resolvable:$true] %s241_s14 }
  0x10   : > { %p882_p12 = scmp.ne.s32.totalorder %s1353_s3, %s881_s17  ;;  %p888_p5 = scmp.lt.u32.totalorder %s881_s17, %s1353_s3 }
  0x11   : > { %p1138_p11 = pnand %p802_p9, %p1358_p1 }
  0x13   : > { %p883_p13 = pneg %p1138_p11 }
  0x15   : > { %p884_p0 = pnand %p883_p13, %p882_p12 }
  0x17   : > { %p885_p3 = pneg %p884_p0 }
  0x19   : > { %p890_p7 = pnand %p888_p5, %p885_p3 }
  0x1b   : > { %893 = shalt.err (!%p890_p7)
}
  0x1c   : > { %s894_s22 = scalar_lea.vmem %s1131_s11, 1024  ;;  %p902_p2 = scmp.lt.s32.totalorder %s1131_s11, %s1131_s11 }
  0x1d   : > { %p895_p9 = scmp.ne.s32.totalorder %s1131_s11, %s894_s22  ;;  %p903_p12 = scmp.lt.s32.totalorder %s894_s22, %s894_s22 }
  0x1f   : > { %p897_p10 = pnand %p895_p9, %p883_p13  ;;  %p904_p0 = por %p903_p12, %p902_p2 }
  0x21   : > { %p898_p1 = pneg %p897_p10 }
  0x23   : > { %p905_p6 = pnand %p904_p0, %p898_p1 }
  0x25   : > { %908 = shalt.err (!%p905_p6)
}
  0x26   : > { %s1041_s23 = smov 64   ;;  %s1042_s29 = smov 4  }
  0x27   : > { %805 = dma.hbm_to_vmem [thread:$0]  (!%p1138_p11), %s1353_s3, 1024, %s1131_s11, [#allocation6], %s1041_s23, %s1041_s23, %s1042_s29  }
  0x28   : > { %s909_s17 = scalar_lea.hbm %s1355_s5, 1024 }
  0x29   : > { %p910_p2 = scmp.ne.s32.totalorder %s1355_s5, %s909_s17  ;;  %p916_p10 = scmp.lt.u32.totalorder %s909_s17, %s1355_s5 }
  0x2b   : > { %p912_p1 = pnand %p910_p2, %p883_p13 }
  0x2d   : > { %p913_p6 = pneg %p912_p1 }
  0x2f   : > { %p918_p3 = pnand %p916_p10, %p913_p6 }
  0x31   : > { %921 = shalt.err (!%p918_p3)
}
  0x32   : > { %s922_s11 = scalar_lea.vmem %s1142_s14, 1024  ;;  %p930_p12 = scmp.lt.s32.totalorder %s1142_s14, %s1142_s14 }
  0x33   : > { %p923_p5 = scmp.ne.s32.totalorder %s1142_s14, %s922_s11  ;;  %p931_p0 = scmp.lt.s32.totalorder %s922_s11, %s922_s11 }
  0x35   : > { %p925_p7 = pnand %p923_p5, %p883_p13  ;;  %p932_p2 = por %p931_p0, %p930_p12 }
  0x37   : > { %p926_p9 = pneg %p925_p7 }
  0x39   : > { %p933_p1 = pnand %p932_p2, %p926_p9 }
  0x3b   : > { %936 = shalt.err (!%p933_p1)
}
  0x3c   : > { %808 = dma.hbm_to_vmem [thread:$0]  (!%p1138_p11), %s1355_s5, 1024, %s1142_s14, [#allocation6], %s1041_s23, %s1041_s23, %s1042_s29  }
  0x3d   : > { %s1197_s13 = sadd.s32 1, %s1037_s27   ;;  %s31_s12 = sadd.s32 1, %s1033_s26 }
  0x3e   : > { %s28_s15 = ssub.s32 %s1037_s27, %s1197_s13  ;;  %p38_p13 = scmp.ne.s32.totalorder %s1033_s26, %s1029_s25 }
  0x3f   : > { %p29_p6 = scmp.eq.s32.totalorder %s28_s15, 0  ;;  %p39_p10 = scmp.eq.s32.totalorder %s1037_s27, 0 }
  0x40   : > { %p1365_p3 = scmp.eq.s32.totalorder %s1108_s28, 1  ;;  %p819_p7 = scmp.lt.s32.totalorder %s1037_s27, 2 }
  0x41   : > { %s1213_s17 = scalar_select %p29_p6, %s1033_s26, %s31_s12  }
  0x42   : > { %p1207_p5 = por %p1365_p3, %p38_p13  ;;  %p40_p9 = por %p39_p10, %p38_p13 }
  0x43   : > { %s258_s18 = sand.u32 1, %s1033_s26   ;;  %s702_s14 = sshll.u32 %s1037_s27, 7 }
  0x44   : > { %s1366_s16 = scalar_select %p1207_p5, 1, 0 }
  0x45   : > { %s701_s19 = sshll.u32 %s258_s18, 3  ;;  %s1220_s20 = scalar_lea.hbm %s1350_s0, %s702_s14 }
  0x46   : > { %s262_s21 = scalar_lea.vmem [#allocation2], %s701_s19  ;;  %p1224_p11 = pnand %p819_p7, %p40_p9 }
  0x47   : > { %s269_s11 = sshll.u32 %s262_s21, 4  ;;  %s259_s10 = scalar_lea.sflag [#allocation3], %s258_s18  ;;  %s1222_s11 = int_to_ptr.vmem [resolvable:$true] %s269_s11 }
  0x48   : > { %s937_s12 = scalar_lea.hbm %s1220_s20, 128  ;;  %p939_p0 = pneg %p1224_p11 }
  0x49   : > { %p938_p12 = scmp.ne.s32.totalorder %s1220_s20, %s937_s12  ;;  %s942_s14 = scalar_lea.hbm %s1350_s0, 256 }
  0x4a   : > { %p943_p13 = scmp.lt.u32.totalorder %s1220_s20, %s1350_s0  ;;  %p944_p6 = scmp.lt.u32.totalorder %s942_s14, %s937_s12 }
  0x4b   : > { %p940_p2 = pnand %p939_p0, %p938_p12  ;;  %p946_p3 = scmp.lt.u32.totalorder %s937_s12, %s1220_s20 }
  0x4c   : > { %p945_p10 = por %p944_p6, %p943_p13 }
  0x4d   : > { %p941_p1 = pneg %p940_p2 }
  0x4e   : > { %p947_p7 = por %p946_p3, %p945_p10 }
  0x50   : > { %p948_p9 = pnand %p947_p7, %p941_p1 }
  0x52   : > { %951 = shalt.err (!%p948_p9)
}
  0x53   : > { %s952_s18 = scalar_lea.vmem %s1222_s11, 128  ;;  %s1043_s21 = smov [#allocation2]  }
  0x54   : > { %p953_p12 = scmp.ne.s32.totalorder %s1222_s11, %s952_s18  ;;  %s957_s15 = sshll.u32 %s1043_s21, 4  ;;  %s958_s15 = int_to_ptr.vmem [resolvable:$false] %s957_s15 }
  0x55   : > { %s959_s19 = scalar_lea.vmem %s958_s15, 256  ;;  %p960_p4 = scmp.lt.s32.totalorder %s1222_s11, %s958_s15 }
  0x56   : > { %p955_p2 = pnand %p953_p12, %p939_p0  ;;  %p961_p13 = scmp.lt.s32.totalorder %s959_s19, %s952_s18 }
  0x58   : > { %p956_p5 = pneg %p955_p2  ;;  %p962_p6 = por %p961_p13, %p960_p4 }
  0x5a   : > { %p963_p10 = pnand %p962_p6, %p956_p5 }
  0x5c   : > { %966 = shalt.err (!%p963_p10)
}
  0x5d   : > { %812 = dma.hbm_to_vmem [thread:$0]  (!%p1224_p11), %s1220_s20, 128, %s1222_s11, %s259_s10  }
  0x5e   : > { %278 = sbr.rel (%p1127_p8) target bundleno = 893 (0x37d), region = 48  ;;  %s1256_s12 = sand.u32 (!%p1127_p8), 1, %s1029_s25  }
  0x5f   : > { %s704_s14 = sshll.u32 (!%p1127_p8), %s1256_s12, 3  ;;  %s281_s23 = scalar_lea.sflag (!%p1127_p8), [#allocation3], %s1256_s12 }
  0x60   : > { %s284_s29 = scalar_lea.vmem (!%p1127_p8), [#allocation2], %s704_s14  ;;  %p1368_p4 = scmp.ne.s32.totalorder (!%p1127_p8), %s1361_s30, 0 }
  0x65   : > { %1012 = dma.done.wait (%p1368_p4), %s281_s23, 128  }
  0x66   : > { %1014 = vsyncadd (%p1368_p4), %s281_s23, 4294967168  ;;  %p1369_p5 = scmp.eq.s32.totalorder %s1108_s28, 0 }
  0x68   : > { %1016 = dma.done.wait (%p1369_p5), [#allocation6], 2048   ;;  %p1370_p8 = pmov %p1369_p5 }
  0x69   : > { %v328_v0 = vld [vmem:[%s284_s29] sm:$0xff]  ;;  %v861_v1 = vld [vmem:[#allocation5] sm:$0xff]   ;;  %v1044_v2 = vmov 0.0   ;;  %v862_v3 = vld [vmem:[#allocation5 + $0x8] sm:$0xff]   ;;  %vm1045_vm0 = vmmov 0   ;;  %s729_s15 = sshll.u32 %s1108_s28, 7 }
  0x6a   : > { %1018 = vsyncadd (%p1370_p8), [#allocation6], 4294965248  ;;  %329 = vadd.xlane.f32.xlu0 %v328_v0  ;;  %750 = vmatprep.subr.bf16.mxu0 %v1044_v2  ;;  %v863_v8 = vld [vmem:[#allocation5 + $0x10] sm:$0xff]   ;;  %v864_v9 = vld [vmem:[#allocation5 + $0x18] sm:$0xff]   ;;  %s322_s19 = scalar_lea.vmem [#allocation8], %s704_s14  ;;  %s1306_s9 = scalar_lea.hbm %s1357_s7, %s729_s15 }
  0x6b   : > { %770 = vmatprep.subr.bf16.mxu1 %v1044_v2  ;;  %751 = vmatpush3.bf16.msra.mxu0 %v861_v1  ;;  %v865_v10 = vld [vmem:[#allocation5 + $0x20] sm:$0xff]   ;;  %v866_v11 = vld [vmem:[#allocation5 + $0x28] sm:$0xff]   ;;  %v867_v12 = vld [vmem:[#allocation5 + $0x30] sm:$0xff]   ;;  %s607_s23 = sshll.u32 %s322_s19, 4  ;;  %s594_s28 = scalar_lea.sflag [#allocation4], %s1256_s12  ;;  %s1308_s23 = int_to_ptr.vmem [resolvable:$true] %s607_s23 }
  0x6c   : > { %752 = vmatprep.subr.bf16.mxu0 %v1044_v2  ;;  %766 = vmatprep.mubr.msk.bf16.mxu0 %vm1045_vm0, %v1044_v2  ;;  %v868_v13 = vld [vmem:[#allocation5 + $0x38] sm:$0xff]   ;;  %v708_v21 = vld [vmem:[%s1351_s1] ss:$0 sm:$0xff]  ;;  %v869_v27 = vld [vmem:[#allocation7] sm:$0xff]   ;;  %s967_s20 = scalar_lea.vmem %s1308_s23, 128  ;;  %p1371_p0 = scmp.ne.s32.totalorder %s1366_s16, 0 }
  0x6d   : > { %786 = vmatprep.mubr.msk.bf16.mxu1 %vm1045_vm0, %v1044_v2  ;;  %v709_v23 = vld [vmem:[%s1352_s2] ss:$0 sm:$0xff]  ;;  %771 = vmatpush3.bf16.msra.mxu1 %v869_v27  ;;  %v870_v28 = vld [vmem:[#allocation7 + $0x8] sm:$0xff]   ;;  %v872_v30 = vld [vmem:[#allocation7 + $0x18] sm:$0xff]   ;;  %p968_p11 = scmp.ne.s32.totalorder %s1308_s23, %s967_s20  ;;  %s1046_s14 = smov [#allocation8]  }
  0x6e   : > { %772 = vmatprep.subr.bf16.mxu1 %v1044_v2  ;;  %v871_v29 = vld [vmem:[#allocation7 + $0x10] sm:$0xff]   ;;  %v873_v31 = vld [vmem:[#allocation7 + $0x20] sm:$0xff]   ;;  %v874_v32 = vld [vmem:[#allocation7 + $0x28] sm:$0xff]   ;;  %s971_s11 = sshll.u32 %s1046_s14, 4  ;;  %s972_s11 = int_to_ptr.vmem [resolvable:$false] %s971_s11 }
  0x6f   : > { %753 = vmatpush3.bf16.msra.mxu0 %v862_v3  ;;  %v875_v33 = vld [vmem:[#allocation7 + $0x30] sm:$0xff]   ;;  %v876_v34 = vld [vmem:[#allocation7 + $0x38] sm:$0xff]   ;;  %p969_p1 = pnand %p968_p11, %p1371_p0  ;;  %s973_s22 = scalar_lea.vmem %s972_s11, 256 }
  0x70   : > { %754 = vmatprep.subr.bf16.mxu0 %v1044_v2  ;;  %v710_v35 = vld [vmem:[%s1354_s4] ss:$0 sm:$0xff]  ;;  %p974_p7 = scmp.lt.s32.totalorder %s1308_s23, %s972_s11  ;;  %p975_p9 = scmp.lt.s32.totalorder %s973_s22, %s967_s20 }
  0x71   : > { %773 = vmatpush3.bf16.msra.mxu1 %v870_v28  ;;  %v719_v51 = vld [vmem:[%s1356_s6] ss:$0 sm:$0xff]  ;;  %p970_p3 = pneg %p969_p1 }
  0x72   : > { %774 = vmatprep.subr.bf16.mxu1 %v1044_v2  ;;  %p976_p12 = por %p975_p9, %p974_p7 }
  0x73   : > { %755 = vmatpush3.bf16.msra.mxu0 %v863_v8 }
  0x74   : > { %756 = vmatprep.subr.bf16.mxu0 %v1044_v2  ;;  %p977_p2 = pnand %p976_p12, %p970_p3 }
  0x75   : > { %775 = vmatpush3.bf16.msra.mxu1 %v871_v29 }
  0x76   : > { %776 = vmatprep.subr.bf16.mxu1 %v1044_v2 }
  0x77   : > { %757 = vmatpush3.bf16.msra.mxu0 %v864_v9 }
  0x78   : > { %758 = vmatprep.subr.bf16.mxu0 %v1044_v2 }
  0x79   : > { %777 = vmatpush3.bf16.msra.mxu1 %v872_v30 }
  0x7a   : > { %778 = vmatprep.subr.bf16.mxu1 %v1044_v2 }
  0x7b   : > { %759 = vmatpush3.bf16.msra.mxu0 %v865_v10 }
  0x7c   : > { %760 = vmatprep.subr.bf16.mxu0 %v1044_v2 }
  0x7d   : > { %779 = vmatpush3.bf16.msra.mxu1 %v873_v31 }
  0x7e   : > { %780 = vmatprep.subr.bf16.mxu1 %v1044_v2 }
  0x7f   : > { %761 = vmatpush3.bf16.msra.mxu0 %v866_v11 }
  0x80   : > { %762 = vmatprep.subr.bf16.mxu0 %v1044_v2 }
  0x81   : > { %781 = vmatpush3.bf16.msra.mxu1 %v874_v32 }
  0x82   : > { %782 = vmatprep.subr.bf16.mxu1 %v1044_v2 }
  0x83   : > { %763 = vmatpush3.bf16.msra.mxu0 %v867_v12 }
  0x84   : > { %764 = vmatprep.subr.bf16.mxu0 %v1044_v2 }
  0x85   : > { %783 = vmatpush3.bf16.msra.mxu1 %v875_v33 }
  0x86   : > { %784 = vmatprep.subr.bf16.mxu1 %v1044_v2 }
  0x87   : > { %765 = vmatpush3.bf16.msra.mxu0 %v868_v13 }
  0x89   : > { %785 = vmatpush3.bf16.msra.mxu1 %v876_v34 }
  0xf7   : > { %v330_v4 = vpop.xlane.xlu0 %329 }
  0xf8   : > { %v331_v5 = vmul.f32 0.03125, %v330_v4 }
  0xfa   : > { %v332_v6 = vsub.f32 %v328_v0, %v331_v5  ;;  %v336_v14 = vmul.f32 96.0, %v331_v5 }
  0xfc   : > { %v333_v7 = vmul.f32 %v332_v6, %v332_v6  ;;  %v337_v15 = vmul.f32 %v336_v14, %v331_v5 }
  0xfe   : > { %334 = vadd.xlane.f32.xlu0 %v333_v7 }
 0x18b   : > { %v335_v16 = vpop.xlane.xlu0 %334 }
 0x18c   : > { %v338_v17 = vsub.f32 %v335_v16, %v337_v15 }
 0x18e   : > { %v339_v18 = vmul.f32 0.03125, %v338_v17 }
 0x190   : > { %v340_v19 = vadd.f32 1e-05, %v339_v18 }
 0x192   : > { %877 = vrsqrt.f32 %v340_v19 }
 0x19c   : > { %v878_v20 = vpop.eup %877 }
 0x19d   : > { %v342_v22 = vmul.f32 %v878_v20, %v332_v6 }
 0x19f   : > { %v350_v24 = vmul.f32 %v708_v21, %v342_v22 }
 0x1a1   : > { %v358_v25 = vadd.f32 %v709_v23, %v350_v24 }
 0x1a3   : > { %v359_v26 = vpack.c.bf16 %v358_v25, %v358_v25 }
 0x1a5   : > { %767 = vmatmul.mubr.bf16.vlgmr.msra.gmra.mrb[0].mxu0 %v359_v26 }
 0x278   : > { %v465_v36 = vpop.f32.mrb[0].mxu0 }
 0x279   : > { %v466_v37 = vadd.f32 %v710_v35, %v465_v36  ;;  %v768_v38 = vpop.f32.mrb[1].mxu0 }
 0x27a   : > { %v468_v39 = vpop.f32.mrb[2].mxu0 }
 0x27b   : > { %v471_v40 = vpack.c.bf16 %v466_v37, %v466_v37  ;;  %v769_v41 = vpop.f32.mrb[3].mxu0 }
 0x27d   : > { %v472_v42 = vmul.bf16 %v471_v40, %v471_v40 }
 0x27f   : > { %v473_v43 = vmul.bf16 %v472_v42, %v471_v40 }
 0x281   : > { %v474_v44 = vmul.bf16 1027030327, %v473_v43 }
 0x283   : > { %v475_v45 = vadd.bf16 %v474_v44, %v471_v40 }
 0x285   : > { %v476_v46 = vmul.bf16 1061961548, %v475_v45 }
 0x287   : > { %879 = vtanh.bf16 %v476_v46 }
 0x292   : > { %v880_v47 = vpop.eup %879 }
 0x293   : > { %v478_v48 = vadd.bf16 1065369472, %v880_v47 }
 0x295   : > { %v479_v49 = vmul.bf16 1056980736, %v478_v48 }
 0x297   : > { %v480_v50 = vmul.bf16 %v479_v49, %v471_v40 }
 0x299   : > { %787 = vmatmul.mubr.bf16.vlgmr.msra.gmra.mrb[0].mxu1 %v480_v50 }
 0x36c   : > { %v586_v52 = vpop.f32.mrb[0].mxu1 }
 0x36d   : > { %v587_v53 = vadd.f32 %v719_v51, %v586_v52  ;;  %v788_v54 = vpop.f32.mrb[1].mxu1 }
 0x36e   : > { %v589_v55 = vpop.f32.mrb[2].mxu1 }
 0x36f   : > { %592 = vst [vmem:[%s322_s19] sm:$0xff] %v587_v53  ;;  %v789_v56 = vpop.f32.mrb[3].mxu1 }
 0x370   : > { %980 = shalt.err (!%p977_p2)
}
 0x371   : > { %s981_s12 = scalar_lea.hbm %s1306_s9, 128  ;;  %s985_s21 = scalar_lea.hbm %s1357_s7, 256 }
 0x372   : > { %p982_p13 = scmp.ne.s32.totalorder %s1306_s9, %s981_s12  ;;  %p986_p4 = scmp.lt.u32.totalorder %s1306_s9, %s1357_s7 }
 0x373   : > { %p987_p5 = scmp.lt.u32.totalorder %s985_s21, %s981_s12  ;;  %p989_p11 = scmp.lt.u32.totalorder %s981_s12, %s1306_s9 }
 0x374   : > { %p983_p6 = pnand %p982_p13, %p1371_p0 }
 0x375   : > { %p988_p8 = por %p987_p5, %p986_p4 }
 0x376   : > { %p984_p10 = pneg %p983_p6 }
 0x377   : > { %p990_p1 = por %p989_p11, %p988_p8 }
 0x379   : > { %p991_p3 = pnand %p990_p1, %p984_p10 }
 0x37b   : > { %994 = shalt.err (!%p991_p3)
}
 0x37c   : > { %800 = dma.vmem_to_hbm [thread:$0]  (%p1371_p0), %s1308_s23, 128, %s1306_s9, %s594_s28  }
 0x37d PF: > { %s619_s29 = sand.u32 1, %s1025_s24   ;;  %p1372_p7 = scmp.ne.s32.totalorder %s1362_s8, 0 }
 0x37e   : > { %p1373_p9 = scmp.ge.s32.totalorder %s1037_s27, 2  ;;  %s620_s30 = scalar_lea.sflag [#allocation4], %s619_s29 }
 0x380   : > { %p814_p12 = pnand %p1373_p9, %p1372_p7 }
 0x382   : > { %1020 = dma.done.wait (!%p814_p12), %s620_s30, 128  }
 0x383   : > { %1022 = vsyncadd (!%p814_p12), %s620_s30, 4294967168  ;;  %p21_p2 = scmp.ge.s32.totalorder %s1197_s13, 4   ;;  %s1374_s24 = smov %s1029_s25 }
 0x384   : > { %s1375_s25 = smov %s1033_s26  ;;  %s1376_s26 = smov %s1213_s17 }
 0x385   : > { %s1377_s27 = smov %s1197_s13  ;;  %23 = sbr.rel (!%p21_p2) target bundleno = 6 (0x6), region = 101 }
 0x38c   :  { %625 = vsyncpa [#allocation3], 1 }
 0x38d   :  { %627 = vsyncpa [#allocation3 + $0x1], 1 }
 0x38e   :  { %628 = vsyncpa [#allocation6], 1 }
 0x38f   :  { %629 = vsyncpa [#allocation4], 1 }
 0x390   :  { %631 = vsyncpa [#allocation4 + $0x1], 1 }

</bundles_post_ra>
